<compile_context>
chip_gen: v5e
topology: v5e:2x2
jax: 0.10.0
libtpu: 0.0.40
codegen_flags: <defaults>
</compile_context>

<pallas_src>
import functools

import jax
import jax.numpy as jnp
from jax.experimental import pallas as pl
from jax.experimental.pallas import tpu as pltpu


def _round_up(n, m):
    return ((n + m - 1) // m) * m


def noisy_nn_kernel(*refs, noise_std, drop_p, use_noise, use_dropout, vpu_fc1):
    """One batch tile: (noise) -> fc1 -> relu -> drop -> fc2 -> relu -> drop -> fc3."""
    x_ref, w1_ref, b1_ref, w2_ref, b2_ref, w3_ref, b3_ref = refs[:7]
    k = 7
    noise_ref = None
    urand_ref = None
    if use_noise:
        noise_ref = refs[k]
        k += 1
    if use_dropout:
        urand_ref = refs[k]
        k += 1
    o_ref = refs[k]

    x = x_ref[...].astype(jnp.float32)
    if use_noise:
        # x + randn_like(x) * noise_std
        x = x + noise_ref[...].astype(jnp.float32) * noise_std

    # ---------------- fc1 ----------------
    if vpu_fc1:
        # K is tiny (input_dim <= 8): unrolled VPU broadcast-FMAs instead of a
        # degenerate MXU matmul (K padded to 128 would waste >98% of the array).
        w1 = w1_ref[...].astype(jnp.float32)
        h1 = x[:, 0:1] * w1[0:1, :]
        for i in range(1, w1_ref.shape[0]):        # static unroll
            h1 = h1 + x[:, i:i + 1] * w1[i:i + 1, :]
        h1 = h1 + b1_ref[...].astype(jnp.float32)
    else:
        h1 = jnp.dot(x.astype(w1_ref.dtype), w1_ref[...],
                     preferred_element_type=jnp.float32)
        h1 = h1 + b1_ref[...].astype(jnp.float32)
    h1 = jnp.maximum(h1, 0.0)

    inv_keep = 1.0 / (1.0 - drop_p) if use_dropout else 1.0
    if use_dropout:
        u1 = urand_ref[0]                           # (TILE_B, hidden) uniforms
        h1 = jnp.where(u1 >= drop_p, h1 * inv_keep, 0.0)

    # ---------------- fc2 (MXU, f32 accumulation) ----------------
    h2 = jnp.dot(h1.astype(w2_ref.dtype), w2_ref[...],
                 preferred_element_type=jnp.float32)
    h2 = h2 + b2_ref[...].astype(jnp.float32)
    h2 = jnp.maximum(h2, 0.0)

    if use_dropout:
        u2 = urand_ref[1]
        h2 = jnp.where(u2 >= drop_p, h2 * inv_keep, 0.0)

    # ---------------- fc3 (MXU; output padded to 128 lanes -> unmasked store) ----
    out = jnp.dot(h2.astype(w3_ref.dtype), w3_ref[...],
                  preferred_element_type=jnp.float32)
    out = out + b3_ref[...].astype(jnp.float32)
    o_ref[...] = out.astype(o_ref.dtype)


def noisy_nn_forward(x, params, *, training=True, noise_std=0.0, drop_p=0.2,
                     rng_key=None, compute_dtype=jnp.bfloat16, tile_b=512):
    """Pallas-backed forward pass of NoisyNN."""
    w1, b1, w2, b2, w3, b3 = params
    batch, in_dim = x.shape
    hidden = w1.shape[1]
    out_dim = w3.shape[1]

    use_noise = bool(training) and float(noise_std) > 0.0
    use_dropout = bool(training) and float(drop_p) > 0.0
    if (use_noise or use_dropout) and rng_key is None:
        rng_key = jax.random.PRNGKey(0)

    # ---- batch tiling (grid over the batch dim; TILE_B multiple of 8) ----
    tb = max(8, min(int(tile_b), _round_up(batch, 8)))
    padded_b = _round_up(batch, tb)
    grid = (padded_b // tb,)
    if padded_b != batch:
        x = jnp.pad(x, ((0, padded_b - batch), (0, 0)))

    # ---- lane-dense output: pad fc3 to a multiple of 128 lanes ----
    out_pad = max(128, _round_up(out_dim, 128))
    w3p = jnp.pad(w3, ((0, 0), (0, out_pad - out_dim)))
    b3p = jnp.pad(b3, (0, out_pad - out_dim))

    # MXU weights stored in compute_dtype (bf16 halves VMEM residency & DMA);
    # accumulation stays f32 inside the kernel.
    w1c = w1.astype(jnp.float32)                  # used on the VPU path, keep f32
    w2c = w2.astype(compute_dtype)
    w3c = w3p.astype(compute_dtype)
    b1r = b1.reshape(1, hidden).astype(jnp.float32)
    b2r = b2.reshape(1, hidden).astype(jnp.float32)
    b3r = b3p.reshape(1, out_pad).astype(jnp.float32)

    inputs = [x, w1c, b1r, w2c, b2r, w3c, b3r]
    in_specs = [
        pl.BlockSpec((tb, in_dim), lambda i: (i, 0)),          # x: tiled over batch
        pl.BlockSpec((in_dim, hidden), lambda i: (0, 0)),      # w1: resident
        pl.BlockSpec((1, hidden), lambda i: (0, 0)),           # b1
        pl.BlockSpec((hidden, hidden), lambda i: (0, 0)),      # w2
        pl.BlockSpec((1, hidden), lambda i: (0, 0)),           # b2
        pl.BlockSpec((hidden, out_pad), lambda i: (0, 0)),     # w3 (padded)
        pl.BlockSpec((1, out_pad), lambda i: (0, 0)),          # b3 (padded)
    ]

    # ---- host-side randomness (interpret-safe), batched into single draws ----
    if use_noise:
        k_noise, rng_key = jax.random.split(rng_key)
        noise = jax.random.normal(k_noise, (padded_b, in_dim), jnp.float32)
        inputs.append(noise)
        in_specs.append(pl.BlockSpec((tb, in_dim), lambda i: (i, 0)))
    if use_dropout:
        k_drop, rng_key = jax.random.split(rng_key)
        urand = jax.random.uniform(k_drop, (2, padded_b, hidden), jnp.float32)
        inputs.append(urand)
        in_specs.append(pl.BlockSpec((2, tb, hidden), lambda i: (0, i, 0)))

    out_specs = pl.BlockSpec((tb, out_pad), lambda i: (i, 0))
    out_shape = jax.ShapeDtypeStruct((padded_b, out_pad), x.dtype)

    # ---- VMEM budget: resident weights + 2x double-buffered tiles + headroom ----
    def _nbytes(a):
        return int(a.size) * jnp.dtype(a.dtype).itemsize

    resident_bytes = sum(_nbytes(a) for a in (w1c, b1r, w2c, b2r, w3c, b3r))
    tile_bytes = tb * in_dim * 4 + tb * out_pad * 4
    if use_noise:
        tile_bytes += tb * in_dim * 4
    if use_dropout:
        tile_bytes += 2 * tb * hidden * 4
    headroom = 6 * tb * hidden * 4 + tb * out_pad * 4 + (2 << 20)
    vmem_limit = int(min(100 << 20,
                         max(4 << 20, resident_bytes + 2 * tile_bytes + headroom)))

    kernel = functools.partial(
        noisy_nn_kernel,
        noise_std=float(noise_std),
        drop_p=float(drop_p),
        use_noise=use_noise,
        use_dropout=use_dropout,
        vpu_fc1=(in_dim <= 8),
    )

    out = pl.pallas_call(
        kernel,
        grid=grid,
        in_specs=in_specs,
        out_specs=out_specs,
        out_shape=out_shape,
        compiler_params=pltpu.CompilerParams(
            dimension_semantics=("parallel",),
            vmem_limit_bytes=vmem_limit,
        ),
    )(*inputs)

    return out[:batch, :out_dim]


def init_params(key, input_dim, hidden_dim, output_dim):
    """Kaiming-uniform-style init (PyTorch nn.Linear default), W stored (in, out)."""
    def linear(k, fan_in, fan_out):
        kw, kb = jax.random.split(k)
        bound = 1.0 / jnp.sqrt(fan_in)
        w = jax.random.uniform(kw, (fan_in, fan_out), jnp.float32, -bound, bound)
        b = jax.random.uniform(kb, (fan_out,), jnp.float32, -bound, bound)
        return w, b

    k1, k2, k3 = jax.random.split(key, 3)
    w1, b1 = linear(k1, input_dim, hidden_dim)
    w2, b2 = linear(k2, hidden_dim, hidden_dim)
    w3, b3 = linear(k3, hidden_dim, output_dim)
    return (w1, b1, w2, b2, w3, b3)


def reference_forward(x, params):
    """Pure-JAX reference (eval mode: no noise, no dropout)."""
    w1, b1, w2, b2, w3, b3 = params
    h1 = jnp.maximum(x @ w1 + b1, 0.0)
    h2 = jnp.maximum(h1 @ w2 + b2, 0.0)
    return h2 @ w3 + b3


if __name__ == "__main__":
    # Small shapes consistent with the module: input_dim=2, output_dim=2.
    # hidden_dim=128 keeps the hidden activations lane-aligned (still small).
    batch, input_dim, hidden_dim, output_dim = 8, 2, 128, 2

    key = jax.random.PRNGKey(0)
    kx, kp = jax.random.split(key)
    x = jax.random.normal(kx, (batch, input_dim), jnp.float32)
    params = init_params(kp, input_dim, hidden_dim, output_dim)

    y_ref = reference_forward(x, params)

    # 1) Eval mode, f32 matmul inputs (MXU f32 path may be multi-pass bf16).
    y_eval = noisy_nn_forward(x, params, training=False,
                              compute_dtype=jnp.float32)
    y_eval = jax.block_until_ready(y_eval)
    assert y_eval.shape == (batch, output_dim)
    assert jnp.allclose(y_eval, y_ref, atol=2e-2, rtol=2e-2)

    # 2) Eval mode, bf16 MXU inputs with f32 accumulation (v6e/v7x fast path).
    y_bf16 = noisy_nn_forward(x, params, training=False,
                              compute_dtype=jnp.bfloat16)
    y_bf16 = jax.block_until_ready(y_bf16)
    assert jnp.allclose(y_bf16, y_ref, atol=5e-2, rtol=5e-2)

    # 3) Training mode: Gaussian input noise + dropout (p=0.2) active.
    y_train = noisy_nn_forward(x, params, training=True, noise_std=0.1,
                               drop_p=0.2, rng_key=jax.random.PRNGKey(123))
    y_train = jax.block_until_ready(y_train)
    assert y_train.shape == (batch, output_dim)
    assert bool(jnp.all(jnp.isfinite(y_train)))

    print("KERNEL_OK")
</pallas_src>

<mosaic_0001>
module attributes {stable_mosaic.version = 11 : i64} {
  func.func @noisy_nn_kernel(%arg0: i32, %arg1: memref<8x2xf32, #tpu.memory_space<vmem>>, %arg2: memref<2x128xf32, #tpu.memory_space<vmem>>, %arg3: memref<1x128xf32, #tpu.memory_space<vmem>>, %arg4: memref<128x128xf32, #tpu.memory_space<vmem>>, %arg5: memref<1x128xf32, #tpu.memory_space<vmem>>, %arg6: memref<128x128xf32, #tpu.memory_space<vmem>>, %arg7: memref<1x128xf32, #tpu.memory_space<vmem>>, %arg8: memref<8x128xf32, #tpu.memory_space<vmem>>) attributes {dimension_semantics = [#tpu.dimension_semantics<parallel>], iteration_bounds = array<i64: 1>, scalar_prefetch = 0 : i64, scratch_operands = 0 : i64, tpu.core_type = #tpu.core_type<tc>, window_params = [{transform_indices = @transform_0, window_bounds = array<i64: 8, 2>}, {pipeline_mode = #tpu.pipeline_mode<synchronous>, transform_indices = @transform_1, window_bounds = array<i64: 2, 128>}, {pipeline_mode = #tpu.pipeline_mode<synchronous>, transform_indices = @transform_2, window_bounds = array<i64: 1, 128>}, {pipeline_mode = #tpu.pipeline_mode<synchronous>, transform_indices = @transform_3, window_bounds = array<i64: 128, 128>}, {pipeline_mode = #tpu.pipeline_mode<synchronous>, transform_indices = @transform_4, window_bounds = array<i64: 1, 128>}, {pipeline_mode = #tpu.pipeline_mode<synchronous>, transform_indices = @transform_5, window_bounds = array<i64: 128, 128>}, {pipeline_mode = #tpu.pipeline_mode<synchronous>, transform_indices = @transform_6, window_bounds = array<i64: 1, 128>}, {transform_indices = @transform_7, window_bounds = array<i64: 8, 128>}]} {
    %c0 = arith.constant 0 : index
    %c0_0 = arith.constant 0 : index
    %0 = vector.load %arg1[%c0, %c0_0] : memref<8x2xf32, #tpu.memory_space<vmem>>, vector<8x2xf32>
    %c0_1 = arith.constant 0 : index
    %c0_2 = arith.constant 0 : index
    %1 = vector.load %arg2[%c0_1, %c0_2] : memref<2x128xf32, #tpu.memory_space<vmem>>, vector<2x128xf32>
    %2 = vector.extract_strided_slice %0 {offsets = [0, 0], sizes = [8, 1], strides = [1, 1]} : vector<8x2xf32> to vector<8x1xf32>
    %3 = vector.extract_strided_slice %1 {offsets = [0, 0], sizes = [1, 128], strides = [1, 1]} : vector<2x128xf32> to vector<1x128xf32>
    %4 = vector.broadcast %2 : vector<8x1xf32> to vector<8x128xf32>
    %5 = vector.broadcast %3 : vector<1x128xf32> to vector<8x128xf32>
    %6 = arith.mulf %4, %5 : vector<8x128xf32>
    %7 = vector.extract_strided_slice %0 {offsets = [0, 1], sizes = [8, 1], strides = [1, 1]} : vector<8x2xf32> to vector<8x1xf32>
    %8 = vector.extract_strided_slice %1 {offsets = [1, 0], sizes = [1, 128], strides = [1, 1]} : vector<2x128xf32> to vector<1x128xf32>
    %9 = vector.broadcast %7 : vector<8x1xf32> to vector<8x128xf32>
    %10 = vector.broadcast %8 : vector<1x128xf32> to vector<8x128xf32>
    %11 = arith.mulf %9, %10 : vector<8x128xf32>
    %12 = arith.addf %6, %11 : vector<8x128xf32>
    %c0_3 = arith.constant 0 : index
    %c0_4 = arith.constant 0 : index
    %13 = vector.load %arg3[%c0_3, %c0_4] : memref<1x128xf32, #tpu.memory_space<vmem>>, vector<1x128xf32>
    %14 = vector.broadcast %13 : vector<1x128xf32> to vector<8x128xf32>
    %15 = arith.addf %12, %14 : vector<8x128xf32>
    %cst = arith.constant 0.000000e+00 : f32
    %16 = vector.broadcast %cst : f32 to vector<8x128xf32>
    %17 = arith.maximumf %15, %16 : vector<8x128xf32>
    %c0_5 = arith.constant 0 : index
    %c0_6 = arith.constant 0 : index
    %18 = vector.load %arg4[%c0_5, %c0_6] : memref<128x128xf32, #tpu.memory_space<vmem>>, vector<128x128xf32>
    %cst_7 = arith.constant dense<0.000000e+00> : vector<8x128xf32>
    %19 = tpu.matmul %17, %18, %cst_7 {dimension_numbers = #tpu.dot_dimension_numbers<[1], [0], [0], [1], [0, 0, 1, 1], [], []>} : vector<8x128xf32>, vector<128x128xf32>, vector<8x128xf32> -> vector<8x128xf32>
    %c0_8 = arith.constant 0 : index
    %c0_9 = arith.constant 0 : index
    %20 = vector.load %arg5[%c0_8, %c0_9] : memref<1x128xf32, #tpu.memory_space<vmem>>, vector<1x128xf32>
    %21 = vector.broadcast %20 : vector<1x128xf32> to vector<8x128xf32>
    %22 = arith.addf %19, %21 : vector<8x128xf32>
    %cst_10 = arith.constant 0.000000e+00 : f32
    %23 = vector.broadcast %cst_10 : f32 to vector<8x128xf32>
    %24 = arith.maximumf %22, %23 : vector<8x128xf32>
    %c0_11 = arith.constant 0 : index
    %c0_12 = arith.constant 0 : index
    %25 = vector.load %arg6[%c0_11, %c0_12] : memref<128x128xf32, #tpu.memory_space<vmem>>, vector<128x128xf32>
    %cst_13 = arith.constant dense<0.000000e+00> : vector<8x128xf32>
    %26 = tpu.matmul %24, %25, %cst_13 {dimension_numbers = #tpu.dot_dimension_numbers<[1], [0], [0], [1], [0, 0, 1, 1], [], []>} : vector<8x128xf32>, vector<128x128xf32>, vector<8x128xf32> -> vector<8x128xf32>
    %c0_14 = arith.constant 0 : index
    %c0_15 = arith.constant 0 : index
    %27 = vector.load %arg7[%c0_14, %c0_15] : memref<1x128xf32, #tpu.memory_space<vmem>>, vector<1x128xf32>
    %28 = vector.broadcast %27 : vector<1x128xf32> to vector<8x128xf32>
    %29 = arith.addf %26, %28 : vector<8x128xf32>
    %c0_16 = arith.constant 0 : index
    %c0_17 = arith.constant 0 : index
    %30 = vector.load %arg8[%c0_16, %c0_17] : memref<8x128xf32, #tpu.memory_space<vmem>>, vector<8x128xf32>
    tpu.vector_store %arg8[%c0_16, %c0_17], %29 {strides = array<i32>} : memref<8x128xf32, #tpu.memory_space<vmem>>, vector<8x128xf32>,
    return
  }
  func.func @transform_0(%arg0: i32) -> (i32, i32) {
    %c0_i32 = arith.constant 0 : i32
    %c0_i32_0 = arith.constant 0 : i32
    return %arg0, %c0_i32 : i32, i32
  }
  func.func @transform_1(%arg0: i32) -> (i32, i32) {
    %c0_i32 = arith.constant 0 : i32
    %c0_i32_0 = arith.constant 0 : i32
    %c0_i32_1 = arith.constant 0 : i32
    return %c0_i32, %c0_i32_0 : i32, i32
  }
  func.func @transform_2(%arg0: i32) -> (i32, i32) {
    %c0_i32 = arith.constant 0 : i32
    %c0_i32_0 = arith.constant 0 : i32
    %c0_i32_1 = arith.constant 0 : i32
    return %c0_i32, %c0_i32_0 : i32, i32
  }
  func.func @transform_3(%arg0: i32) -> (i32, i32) {
    %c0_i32 = arith.constant 0 : i32
    %c0_i32_0 = arith.constant 0 : i32
    %c0_i32_1 = arith.constant 0 : i32
    return %c0_i32, %c0_i32_0 : i32, i32
  }
  func.func @transform_4(%arg0: i32) -> (i32, i32) {
    %c0_i32 = arith.constant 0 : i32
    %c0_i32_0 = arith.constant 0 : i32
    %c0_i32_1 = arith.constant 0 : i32
    return %c0_i32, %c0_i32_0 : i32, i32
  }
  func.func @transform_5(%arg0: i32) -> (i32, i32) {
    %c0_i32 = arith.constant 0 : i32
    %c0_i32_0 = arith.constant 0 : i32
    %c0_i32_1 = arith.constant 0 : i32
    return %c0_i32, %c0_i32_0 : i32, i32
  }
  func.func @transform_6(%arg0: i32) -> (i32, i32) {
    %c0_i32 = arith.constant 0 : i32
    %c0_i32_0 = arith.constant 0 : i32
    %c0_i32_1 = arith.constant 0 : i32
    return %c0_i32, %c0_i32_0 : i32, i32
  }
  func.func @transform_7(%arg0: i32) -> (i32, i32) {
    %c0_i32 = arith.constant 0 : i32
    %c0_i32_0 = arith.constant 0 : i32
    return %arg0, %c0_i32 : i32, i32
  }
}

</mosaic_0001>

<bundles_post_ra>
// kernel: tpu_custom_call.1
= control target key start
LH: loop header
LB: loop body
LE: loop exit
PB: predicated region body
PF: predicated region fallthrough
CT: control target
= control target key end

     0   :  { %12 = vsyncpa [#allocation3], 0  ;;  %s342_s0 = inlined_call_operand.vmem [shape: f32[8,2], index: 0, kind: input, shape index: {}]   ;;  %s343_s1 = inlined_call_operand.vmem [shape: f32[2,128], index: 1, kind: input, shape index: {}]   ;;  %s344_s2 = inlined_call_operand.vmem [shape: f32[1,128], index: 2, kind: input, shape index: {}]   ;;  %s345_s3 = inlined_call_operand.hbm [shape: f32[128,128], index: 3, kind: input, shape index: {}]   ;;  %s346_s4 = inlined_call_operand.vmem [shape: f32[1,128], index: 4, kind: input, shape index: {}]   ;;  %s347_s5 = inlined_call_operand.hbm [shape: f32[128,128], index: 5, kind: input, shape index: {}]   ;;  %s348_s6 = inlined_call_operand.vmem [shape: f32[1,128], index: 6, kind: input, shape index: {}]   ;;  %s349_s7 = inlined_call_operand.hbm [shape: f32[8,128], index: 7, kind: output, shape index: {}]  }
   0x1   :  { %13 = vsyncpa [#allocation6], 0 }
   0x2   :  { %14 = vsyncpa [#allocation4], 0  ;;  %s25_s26 = sshll.u32 %s345_s3, 4  ;;  %s271_s27 = smov [#allocation2]   ;;  %s26_s26 = int_to_ptr.hbm [resolvable:$true] %s25_s26 }
   0x3   :  { %s27_s28 = sshll.u32 %s271_s27, 4  ;;  %s40_s8 = sshll.u32 %s347_s5, 4  ;;  %s28_s28 = int_to_ptr.vmem [resolvable:$true] %s27_s28  ;;  %s41_s8 = int_to_ptr.hbm [resolvable:$true] %s40_s8 }
   0x4   :  { %s272_s9 = smov 128   ;;  %s273_s10 = smov 8  }
   0x5   :  { %33 = dma.hbm_to_vmem [thread:$0]  %s26_s26, 2048, %s28_s28, [#allocation3], %s272_s9, %s272_s9, %s273_s10  }
   0x6   :  { %s274_s11 = smov [#allocation5]  }
   0x7   :  { %s42_s12 = sshll.u32 %s274_s11, 4  ;;  %s43_s12 = int_to_ptr.vmem [resolvable:$true] %s42_s12 }
   0x8   :  { %48 = dma.hbm_to_vmem [thread:$0]  %s41_s8, 2048, %s43_s12, [#allocation6], %s272_s9, %s272_s9, %s273_s10  }
   0x9   :  { %265 = dma.done.wait [#allocation3], 2048  }
   0xa   :  { %266 = vsyncadd [#allocation3], 4294965248 }
   0xb   :  { %267 = dma.done.wait [#allocation6], 2048  }
   0xc   :  { %268 = vsyncadd [#allocation6], 4294965248  ;;  %v275_v0 = vmov 0   ;;  %v59_v1 = vld [vmem:[%s342_s0] sm:$0xff]  ;;  %v96_v2 = vld [vmem:[#allocation2 + $0x78] sm:$0xff]  ;;  %v276_v8 = vmov 1  }
   0xd   :  { %188 = vset.pattern.permute.xlu0 %v275_v0  ;;  %v95_v3 = vld [vmem:[#allocation2 + $0x70] sm:$0xff]  ;;  %101 = vmatpush.msra.mxu0 %v96_v2  ;;  %v94_v4 = vld [vmem:[#allocation2 + $0x68] sm:$0xff]  ;;  %v93_v5 = vld [vmem:[#allocation2 + $0x60] sm:$0xff]  ;;  %s277_s18 = smov [#allocation7]   ;;  %s170_s22 = sshll.u32 %s349_s7, 4  ;;  %s171_s22 = int_to_ptr.hbm [resolvable:$true] %s170_s22 }
   0xe   :  { %63 = vperm.xlu0 %188, %v59_v1   ;;  %v92_v6 = vld [vmem:[#allocation2 + $0x58] sm:$0xff]  ;;  %v91_v7 = vld [vmem:[#allocation2 + $0x50] sm:$0xff]  ;;  %v90_v9 = vld [vmem:[#allocation2 + $0x48] sm:$0xff]  ;;  %s168_s19 = sshll.u32 %s277_s18, 4  ;;  %s169_s19 = int_to_ptr.vmem [resolvable:$true] %s168_s19 }
   0xf   :  { %102 = vmatpush.msra.mxu0 %v95_v3  ;;  %v89_v10 = vld [vmem:[#allocation2 + $0x40] sm:$0xff]  ;;  %v88_v11 = vld [vmem:[#allocation2 + $0x38] sm:$0xff]  ;;  %v87_v12 = vld [vmem:[#allocation2 + $0x30] sm:$0xff] }
  0x10   :  { %v86_v13 = vld [vmem:[#allocation2 + $0x28] sm:$0xff]  ;;  %v85_v14 = vld [vmem:[#allocation2 + $0x20] sm:$0xff]  ;;  %v84_v15 = vld [vmem:[#allocation2 + $0x18] sm:$0xff] }
  0x11   :  { %103 = vmatpush.msra.mxu0 %v94_v4  ;;  %v83_v16 = vld [vmem:[#allocation2 + $0x10] sm:$0xff]  ;;  %v82_v17 = vld [vmem:[#allocation2 + $0x8] sm:$0xff]  ;;  %v81_v18 = vld [vmem:[#allocation2] sm:$0xff] }
  0x12   :  { %v137_v19 = vld [vmem:[#allocation5 + $0x78] sm:$0xff]  ;;  %v136_v20 = vld [vmem:[#allocation5 + $0x70] sm:$0xff]  ;;  %v135_v21 = vld [vmem:[#allocation5 + $0x68] sm:$0xff] }
  0x13   :  { %104 = vmatpush.msra.mxu0 %v93_v5  ;;  %142 = vmatpush.msra.mxu1 %v137_v19  ;;  %v134_v22 = vld [vmem:[#allocation5 + $0x60] sm:$0xff]  ;;  %v133_v23 = vld [vmem:[#allocation5 + $0x58] sm:$0xff]  ;;  %v132_v24 = vld [vmem:[#allocation5 + $0x50] sm:$0xff] }
  0x14   :  { %v131_v25 = vld [vmem:[#allocation5 + $0x48] sm:$0xff]  ;;  %v130_v26 = vld [vmem:[#allocation5 + $0x40] sm:$0xff]  ;;  %v129_v28 = vld [vmem:[#allocation5 + $0x38] sm:$0xff] }
  0x15   :  { %105 = vmatpush.msra.mxu0 %v92_v6  ;;  %143 = vmatpush.msra.mxu1 %v136_v20  ;;  %v128_v29 = vld [vmem:[#allocation5 + $0x30] sm:$0xff]  ;;  %v60_v30 = vld [vmem:[%s343_s1] sm:$0x3]  ;;  %v127_v31 = vld [vmem:[#allocation5 + $0x28] sm:$0xff] }
  0x16   :  { %189 = vset.pattern.permute.xlu0 %v276_v8  ;;  %v66_v32 = vperm.slane %v60_v30, 0  ;;  %v72_v33 = vperm.slane %v60_v30, 1  ;;  %v126_v34 = vld [vmem:[#allocation5 + $0x20] sm:$0xff]  ;;  %v125_v35 = vld [vmem:[#allocation5 + $0x18] sm:$0xff]  ;;  %v124_v43 = vld [vmem:[#allocation5 + $0x10] sm:$0xff] }
  0x17   :  { %69 = vperm.xlu0 %189, %v59_v1   ;;  %106 = vmatpush.msra.mxu0 %v91_v7  ;;  %v190_v39 = vld [vmem:[%s344_s2] ss:$0 sm:$0xff]  ;;  %v123_v44 = vld [vmem:[#allocation5 + $0x8] sm:$0xff] }
  0x18   :  { %144 = vmatpush.msra.mxu1 %v135_v21  ;;  %v122_v45 = vld [vmem:[#allocation5] sm:$0xff] }
  0x19   :  { %107 = vmatpush.msra.mxu0 %v90_v9  ;;  %v191_v46 = vld [vmem:[%s346_s4] ss:$0 sm:$0xff] }
  0x1a   :  { %145 = vmatpush.msra.mxu1 %v134_v22  ;;  %v192_v50 = vld [vmem:[%s348_s6] ss:$0 sm:$0xff] }
  0x1b   :  { %108 = vmatpush.msra.mxu0 %v89_v10 }
  0x1c   :  { %146 = vmatpush.msra.mxu1 %v133_v23 }
  0x1d   :  { %109 = vmatpush.msra.mxu0 %v88_v11 }
  0x1e   :  { %147 = vmatpush.msra.mxu1 %v132_v24 }
  0x1f   :  { %110 = vmatpush.msra.mxu0 %v87_v12 }
  0x20   :  { %148 = vmatpush.msra.mxu1 %v131_v25 }
  0x21   :  { %111 = vmatpush.msra.mxu0 %v86_v13 }
  0x22   :  { %149 = vmatpush.msra.mxu1 %v130_v26 }
  0x23   :  { %112 = vmatpush.msra.mxu0 %v85_v14 }
  0x24   :  { %150 = vmatpush.msra.mxu1 %v129_v28 }
  0x25   :  { %113 = vmatpush.msra.mxu0 %v84_v15 }
  0x26   :  { %151 = vmatpush.msra.mxu1 %v128_v29 }
  0x27   :  { %114 = vmatpush.msra.mxu0 %v83_v16 }
  0x28   :  { %152 = vmatpush.msra.mxu1 %v127_v31 }
  0x29   :  { %115 = vmatpush.msra.mxu0 %v82_v17 }
  0x2a   :  { %153 = vmatpush.msra.mxu1 %v126_v34 }
  0x2b   :  { %116 = vmatpush.msra.mxu0 %v81_v18 }
  0x2c   :  { %154 = vmatpush.msra.mxu1 %v125_v35 }
  0x2e   :  { %155 = vmatpush.msra.mxu1 %v124_v43 }
  0x30   :  { %156 = vmatpush.msra.mxu1 %v123_v44 }
  0x32   :  { %157 = vmatpush.msra.mxu1 %v122_v45 }
  0x80   :  { %v64_v27 = vpop.permute.xlu0 %63 }
  0x81   :  { %v67_v37 = vmul.f32 %v66_v32, %v64_v27 }
  0x89   :  { %v70_v36 = vpop.permute.xlu0 %69 }
  0x8a   :  { %v73_v38 = vmul.f32 %v72_v33, %v70_v36 }
  0x8c   :  { %v74_v40 = vadd.f32 %v73_v38, %v67_v37 }
  0x8e   :  { %v79_v41 = vadd.f32 %v190_v39, %v74_v40 }
  0x90   :  { %v80_v42 = vmax.f32 %v79_v41, 0.0 }
  0x92   :  { %117 = vmatmul.f32.vlgmr.msra.gmra.mxu0 %v80_v42 }
 0x10f   :  { %v118_v47 = vpop.f32.mrf.mxu0 }
 0x110   :  { %v119_v48 = vadd.f32 %v191_v46, %v118_v47 }
 0x112   :  { %v121_v49 = vmax.f32 %v119_v48, 0.0 }
 0x114   :  { %158 = vmatmul.f32.vlgmr.msra.gmra.mxu1 %v121_v49 }
 0x191   :  { %v159_v51 = vpop.f32.mrf.mxu1 }
 0x192   :  { %v160_v52 = vadd.f32 %v192_v50, %v159_v51 }
 0x194   :  { %162 = vst [vmem:[#allocation7] sm:$0xff] %v160_v52 }
 0x195   :  { %173 = dma.vmem_to_hbm [thread:$0]  %s169_s19, 128, %s171_s22, [#allocation4]  }
 0x196   :  { %269 = dma.done.wait [#allocation4], 128  }
 0x197   :  { %270 = vsyncadd [#allocation4], 4294967168 }
 0x198   :  { %178 = vsyncpa [#allocation3], 1 }
 0x199   :  { %179 = vsyncpa [#allocation6], 1 }
 0x19a   :  { %180 = vsyncpa [#allocation4], 1 }

</bundles_post_ra>
